<compile_context>
chip_gen: v7x
topology: tpu7x:2x2x1
jax: 0.10.0
libtpu: 0.0.40
codegen_flags: <defaults>
</compile_context>

<pallas_src>
import math
import numpy as np
import jax
import jax.numpy as jnp
from jax import lax
from jax.experimental import pallas as pl
from jax.experimental.pallas import tpu as pltpu


# ------------------------- Pruner math (scalar glue) -------------------------

def pruner_sg(w, m=100000.0):
    """sg() = saw(w) + gate(w) from the Pruner module (scalar)."""
    saw = (m * w - jnp.floor(m * w)) / m
    # 0.5*w/|w| + 0.5 == 0.5*sign(w) + 0.5 for w != 0; guard w == 0, which the PyTorch
    # expression turns into NaN (a deadheaded pruner at exactly 0 would poison the mask).
    gate = jnp.where(w == 0.0, 0.5, 0.5 * jnp.sign(w) + 0.5)
    return saw + gate


def gen_masks(k):
    """Reproduce ContConv2d.gen_masks() (static, numpy)."""
    sizes = list(range(1, k + 1, 2))
    mid = k // 2
    k_masks = {}
    for size in sizes:
        mask = np.zeros((k, k), np.float32)
        adj = (size - 1) // 2
        mask[mid - adj:mid + adj + 1, mid - adj:mid + adj + 1] = 1.0
        for sub in sizes[::-1]:
            if sub < size:
                mask *= (~k_masks[str(sub)].astype(bool)).astype(np.float32)
        k_masks[str(size)] = mask
    base = np.zeros((k, k), np.float32)
    base[::2, ::2] = 1.0
    base[1:-1:2, 1:-1:2] = 1.0
    dil = (~base.astype(bool)).astype(np.float32)
    return sizes, k_masks, base, dil


def build_mask(k, d_pruner_w, k_pruner_ws):
    """ContConv2d.mask() for the non-unique path: (base + sg_d*dil) * sum_s sg_s*k_mask_s."""
    sizes, k_masks, base, dil = gen_masks(k)
    base = jnp.asarray(base)
    dil = jnp.asarray(dil)
    d_mask = base + pruner_sg(d_pruner_w) * dil
    k_mask = jnp.zeros((k, k), jnp.float32)
    for s in sizes:
        k_mask = k_mask + pruner_sg(k_pruner_ws[str(s)]) * jnp.asarray(k_masks[str(s)])
    return d_mask * k_mask  # (k, k)


# ------------------------------ Pallas kernels --------------------------------

def _gemm_kernel_single(p_ref, w_ref, o_ref):
    # Whole contraction in one block: one MXU dot, stored straight into the output block.
    # p_ref: (1, CKK, TSP) bf16   w_ref: (1, C_out_g, CKK) bf16   o_ref: (1, C_out_g, TSP)
    o_ref[0] = jnp.dot(w_ref[0], p_ref[0],
                       preferred_element_type=jnp.float32).astype(o_ref.dtype)


def _gemm_kernel_acc(p_ref, w_ref, o_ref):
    # Tiled contraction: the f32 output block is resident across the k axis (its index_map
    # ignores k), so accumulate directly into it — no scratch, no epilogue copy.
    k = pl.program_id(2)

    @pl.when(k == 0)
    def _():
        o_ref[...] = jnp.zeros_like(o_ref)

    o_ref[0] += jnp.dot(w_ref[0], p_ref[0], preferred_element_type=jnp.float32)


# ------------------------------ tiling heuristics ------------------------------

def _tpu_vmem_and_gen():
    """(vmem_capacity_bytes, is_v7x) — generation-aware, with safe fallbacks."""
    try:
        kind = jax.devices()[0].device_kind.lower()
    except Exception:
        kind = ""
    is_v7 = "v7" in kind
    try:
        cap = int(pltpu.get_tpu_info().vmem_capacity_bytes)
    except Exception:
        cap = (64 if is_v7 else 128) * 2 ** 20
    return cap, is_v7


def _pick_k_tile(ckk_pad):
    """Tile the contraction axis only when it is large and 128-aligned."""
    if ckk_pad > 1024 and ckk_pad % 128 == 0:
        for d in (1024, 512, 256, 128):
            if ckk_pad % d == 0:
                return d
    return ckk_pad


def _pick_spatial_tile(nsp, groups, tk, c_out_g, itemsize, budget, min_parallel):
    """Largest multiple-of-128 divisor of nsp that fits the VMEM budget; on v7x prefer one
    that still leaves >= min_parallel parallel grid steps (so both TCs get work)."""
    cands = [d for d in range(128, nsp + 1, 128) if nsp % d == 0]
    if not cands:
        return nsp  # non-128-aligned fallback (nsp is padded to 128 upstream, so unused)

    def fits(tsp):
        # double-buffered patch block + weight block + output block (+ slack handled by caller)
        blk = (2 * tk * tsp * itemsize
               + 2 * c_out_g * tk * itemsize
               + 2 * c_out_g * tsp * 4)
        return blk <= budget

    for d in sorted(cands, reverse=True):
        if fits(d) and groups * (nsp // d) >= min_parallel:
            return d
    for d in sorted(cands, reverse=True):
        if fits(d):
            return d
    return cands[0]


# --------------------------------- forward ------------------------------------

def cont_conv2d(x, weight, mask, *, stride, padding, groups, mxu_dtype=jnp.bfloat16):
    """Forward of ContConv2d: conv2d(x, weight * mask, stride, padding, groups). NCHW."""
    N, C_in, H, W = x.shape
    C_out, Cin_g, K, _ = weight.shape
    C_out_g = C_out // groups
    OH = (H + 2 * padding - K) // stride + 1
    OW = (W + 2 * padding - K) // stride + 1
    OHW = OH * OW
    NSP = N * OHW                       # batch folded into the lane axis
    CKK = Cin_g * K * K
    CKK_pad = ((CKK + 15) // 16) * 16   # bf16 packs 16 rows per vreg
    NSP_pad = ((NSP + 127) // 128) * 128

    itemsize = jnp.dtype(mxu_dtype).itemsize

    # Fuse the Pruner mask into the weight once (f32 elementwise, tiny) and lay it out
    # matmul-ready; only the MXU operands get cast to the MXU dtype.
    # TODO(synk): optional fp8 operand path for v7x (p/w2 in fp8, f32 accumulate).
    w2 = (weight * mask[None, None, :, :]).reshape(groups, C_out_g, CKK)
    if CKK_pad != CKK:
        w2 = jnp.pad(w2, ((0, 0), (0, 0), (0, CKK_pad - CKK)))
    w2 = w2.astype(mxu_dtype)

    # im2col in the wrapper: lane-dense (CKK_pad, N*OH*OW) patch slabs per group.
    # TODO(synk): for very large images an in-kernel halo'd row-tile DMA would avoid the
    # K*K patch expansion (and the padded copy) in HBM; at these sizes GEMM layout wins.
    xp = jnp.pad(x, ((0, 0), (0, 0), (padding, padding), (padding, padding)))
    taps = []
    for kh in range(K):
        for kw in range(K):
            taps.append(xp[:, :,
                           kh:kh + (OH - 1) * stride + 1:stride,
                           kw:kw + (OW - 1) * stride + 1:stride])
    p = jnp.stack(taps, axis=2)                                  # (N, C_in, K*K, OH, OW)
    p = p.reshape(N, groups, Cin_g, K * K, OHW)
    p = p.transpose(1, 2, 3, 0, 4).reshape(groups, CKK, NSP)     # contraction = (cin, kh, kw)
    if CKK_pad != CKK or NSP_pad != NSP:
        p = jnp.pad(p, ((0, 0), (0, CKK_pad - CKK), (0, NSP_pad - NSP)))
    p = p.astype(mxu_dtype)

    # Generation-aware tiling & VMEM budget (keep headroom for compiler-internal scratch).
    vmem_cap, is_v7 = _tpu_vmem_and_gen()
    budget = int(vmem_cap * 3 // 4)
    min_parallel = 2 if is_v7 else 1    # keep both v7x TensorCores busy when possible

    TK = _pick_k_tile(CKK_pad)
    TSP = _pick_spatial_tile(NSP_pad, groups, TK, C_out_g, itemsize, budget, min_parallel)
    n_sp = NSP_pad // TSP
    n_k = CKK_pad // TK

    out_dtype = x.dtype if (n_k == 1 and x.dtype in (jnp.float32, jnp.bfloat16)) else jnp.float32
    out_itemsize = jnp.dtype(out_dtype).itemsize

    blk_bytes = (2 * TK * TSP * itemsize
                 + 2 * C_out_g * TK * itemsize
                 + 2 * C_out_g * TSP * 4)
    vmem_limit = int(min(budget, max(16 * 2 ** 20, 4 * blk_bytes)))

    cost = pl.CostEstimate(
        flops=2 * groups * C_out_g * NSP * CKK,
        transcendentals=0,
        bytes_accessed=(groups * CKK_pad * NSP_pad * itemsize
                        + groups * C_out_g * CKK_pad * itemsize
                        + groups * C_out_g * NSP_pad * out_itemsize),
    )

    if n_k == 1:
        out = pl.pallas_call(
            _gemm_kernel_single,
            out_shape=jax.ShapeDtypeStruct((groups, C_out_g, NSP_pad), out_dtype),
            grid_spec=pltpu.PrefetchScalarGridSpec(
                num_scalar_prefetch=0,
                grid=(groups, n_sp),
                in_specs=[
                    pl.BlockSpec((1, CKK_pad, TSP), lambda g, s: (g, 0, s)),
                    pl.BlockSpec((1, C_out_g, CKK_pad), lambda g, s: (g, 0, 0)),
                ],
                out_specs=pl.BlockSpec((1, C_out_g, TSP), lambda g, s: (g, 0, s)),
            ),
            compiler_params=pltpu.CompilerParams(
                dimension_semantics=("parallel", "parallel"),
                vmem_limit_bytes=vmem_limit,
            ),
            cost_estimate=cost,
        )(p, w2)
    else:
        out = pl.pallas_call(
            _gemm_kernel_acc,
            out_shape=jax.ShapeDtypeStruct((groups, C_out_g, NSP_pad), jnp.float32),
            grid_spec=pltpu.PrefetchScalarGridSpec(
                num_scalar_prefetch=0,
                grid=(groups, n_sp, n_k),
                in_specs=[
                    pl.BlockSpec((1, TK, TSP), lambda g, s, k: (g, k, s)),
                    pl.BlockSpec((1, C_out_g, TK), lambda g, s, k: (g, 0, k)),
                ],
                out_specs=pl.BlockSpec((1, C_out_g, TSP), lambda g, s, k: (g, 0, s)),
            ),
            compiler_params=pltpu.CompilerParams(
                dimension_semantics=("parallel", "parallel", "arbitrary"),
                vmem_limit_bytes=vmem_limit,
            ),
            cost_estimate=cost,
        )(p, w2)

    # (groups, C_out_g, NSP_pad) -> NCHW
    out = out[:, :, :NSP].reshape(groups, C_out_g, N, OHW)
    out = out.transpose(2, 0, 1, 3).reshape(N, C_out, OH, OW)
    return out.astype(x.dtype)


# ---------------------------------- main --------------------------------------

if __name__ == "__main__":
    # Module config: ContConv2d(c_in, c_out, kernel_size, groups, stride, padding)
    c_in, c_out, kernel_size, groups, stride, padding = 4, 8, 3, 1, 1, 1
    N, H, W = 2, 16, 16

    key = jax.random.PRNGKey(0)
    kx, kw = jax.random.split(key)

    # Input
    x = jax.random.normal(kx, (N, c_in, H, W), dtype=jnp.float32)

    # Weight: deterministic kaiming-uniform-style init (shape [c_out, c_in//groups, k, k])
    dim2 = c_in // groups
    fan_in = dim2 * kernel_size * kernel_size
    gain = math.sqrt(2.0 / (1.0 + 5.0))           # kaiming_uniform_ default a=sqrt(5)
    bound = gain * math.sqrt(3.0 / fan_in)
    weight = jax.random.uniform(kw, (c_out, dim2, kernel_size, kernel_size),
                                dtype=jnp.float32, minval=-bound, maxval=bound)

    # Pruner parameters: one dilation pruner + one per odd kernel size, all init 0.005
    d_pruner_w = jnp.asarray([0.005], jnp.float32)
    sizes = list(range(1, kernel_size + 1, 2))
    k_pruner_ws = {str(s): jnp.asarray([0.005], jnp.float32) for s in sizes}

    # mask() — K x K gating mask; pruner gating is scalar glue, fused into the weight.
    mask = build_mask(kernel_size, d_pruner_w, k_pruner_ws)

    # Pallas forward
    y = cont_conv2d(x, weight, mask, stride=stride, padding=padding, groups=groups)
    y = jax.block_until_ready(y)

    w_masked = weight * mask[None, None, :, :]

    # Reference 1: same operand rounding (bf16 operands, f32 accumulation) — tight check.
    y_ref_bf16 = lax.conv_general_dilated(
        x.astype(jnp.bfloat16), w_masked.astype(jnp.bfloat16),
        window_strides=(stride, stride),
        padding=[(padding, padding), (padding, padding)],
        dimension_numbers=("NCHW", "OIHW", "NCHW"),
        feature_group_count=groups,
        preferred_element_type=jnp.float32)
    np.testing.assert_allclose(np.asarray(y), np.asarray(y_ref_bf16), rtol=1e-3, atol=1e-3)

    # Reference 2: full-f32 conv (loose tolerance to cover bf16 MXU operand rounding).
    y_ref_f32 = lax.conv_general_dilated(
        x, w_masked,
        window_strides=(stride, stride),
        padding=[(padding, padding), (padding, padding)],
        dimension_numbers=("NCHW", "OIHW", "NCHW"),
        feature_group_count=groups)
    np.testing.assert_allclose(np.asarray(y), np.asarray(y_ref_f32), rtol=3e-2, atol=3e-2)

    # TODO(synk): Pruner bookkeeping (weight_history, track_gates, deadhead) is host-side
    # training machinery, not part of the forward pass, so it is not kernelized.
    print("KERNEL_OK")
</pallas_src>

<mosaic_0001>
module attributes {stable_mosaic.version = 11 : i64} {
  func.func @_gemm_kernel_single(%arg0: i32, %arg1: i32, %arg2: memref<1x48x512xbf16, #tpu.memory_space<vmem>>, %arg3: memref<1x8x48xbf16, #tpu.memory_space<vmem>>, %arg4: memref<1x8x512xf32, #tpu.memory_space<vmem>>) attributes {dimension_semantics = [#tpu.dimension_semantics<parallel>, #tpu.dimension_semantics<parallel>], iteration_bounds = array<i64: 1, 1>, scalar_prefetch = 0 : i64, scratch_operands = 0 : i64, tpu.core_type = #tpu.core_type<tc>, window_params = [{transform_indices = @transform_0, window_bounds = array<i64: 1, 48, 512>}, {transform_indices = @transform_1, window_bounds = array<i64: 1, 8, 48>}, {transform_indices = @transform_2, window_bounds = array<i64: 1, 8, 512>}]} {
    %c0 = arith.constant 0 : index
    %c0_0 = arith.constant 0 : index
    %c0_1 = arith.constant 0 : index
    %0 = vector.load %arg3[%c0, %c0_0, %c0_1] : memref<1x8x48xbf16, #tpu.memory_space<vmem>>, vector<1x8x48xbf16>
    %1 = vector.shape_cast %0 : vector<1x8x48xbf16> to vector<8x48xbf16>
    %c0_2 = arith.constant 0 : index
    %c0_3 = arith.constant 0 : index
    %c0_4 = arith.constant 0 : index
    %2 = vector.load %arg2[%c0_2, %c0_3, %c0_4] : memref<1x48x512xbf16, #tpu.memory_space<vmem>>, vector<1x48x512xbf16>
    %3 = vector.shape_cast %2 : vector<1x48x512xbf16> to vector<48x512xbf16>
    %cst = arith.constant dense<0.000000e+00> : vector<8x512xf32>
    %4 = tpu.matmul %1, %3, %cst {dimension_numbers = #tpu.dot_dimension_numbers<[1], [0], [0], [1], [0, 0, 1, 1], [], []>} : vector<8x48xbf16>, vector<48x512xbf16>, vector<8x512xf32> -> vector<8x512xf32>
    %c0_5 = arith.constant 0 : index
    %c0_6 = arith.constant 0 : index
    %c0_7 = arith.constant 0 : index
    %5 = vector.load %arg4[%c0_5, %c0_6, %c0_7] : memref<1x8x512xf32, #tpu.memory_space<vmem>>, vector<1x8x512xf32>
    %6 = vector.shape_cast %5 : vector<1x8x512xf32> to vector<8x512xf32>
    %7 = vector.shape_cast %4 : vector<8x512xf32> to vector<1x8x512xf32>
    tpu.vector_store %arg4[%c0_5, %c0_6, %c0_7], %7 {strides = array<i32>} : memref<1x8x512xf32, #tpu.memory_space<vmem>>, vector<1x8x512xf32>,
    return
  }
  func.func @transform_0(%arg0: i32, %arg1: i32) -> (i32, i32, i32) {
    %c0_i32 = arith.constant 0 : i32
    %c0_i32_0 = arith.constant 0 : i32
    return %arg0, %c0_i32, %arg1 : i32, i32, i32
  }
  func.func @transform_1(%arg0: i32, %arg1: i32) -> (i32, i32, i32) {
    %c0_i32 = arith.constant 0 : i32
    %c0_i32_0 = arith.constant 0 : i32
    %c0_i32_1 = arith.constant 0 : i32
    return %arg0, %c0_i32, %c0_i32_0 : i32, i32, i32
  }
  func.func @transform_2(%arg0: i32, %arg1: i32) -> (i32, i32, i32) {
    %c0_i32 = arith.constant 0 : i32
    %c0_i32_0 = arith.constant 0 : i32
    return %arg0, %c0_i32, %arg1 : i32, i32, i32
  }
}

</mosaic_0001>

<bundles_post_ra>
// kernel: tpu_custom_call.1
= control target key start
LH: loop header
LB: loop body
LE: loop exit
PB: predicated region body
PF: predicated region fallthrough
CT: control target
= control target key end

     0   :  { %7 = vsyncpa [#allocation3], 0  ;;  %s385_s0 = inlined_call_operand.hbm [shape: bf16[1,48,512], index: 0, kind: input, shape index: {}]   ;;  %s386_s1 = inlined_call_operand.hbm [shape: bf16[1,8,48], index: 1, kind: input, shape index: {}]   ;;  %s387_s2 = inlined_call_operand.hbm [shape: f32[1,8,512], index: 2, kind: output, shape index: {}]  }
   0x1   :  { %8 = vsyncpa [#allocation6], 0 }
   0x2   :  { %9 = vsyncpa [#allocation4], 0  ;;  %s328_s9 = smov [#allocation2]   ;;  %s256_s13 = scalar_lea.hbm %s385_s0, 1536 }
   0x3   :  { %s15_s10 = sshll.u32 %s328_s9, 4  ;;  %p257_p0 = scmp.ne.s32.totalorder %s385_s0, %s256_s13  ;;  %s16_s10 = int_to_ptr.vmem [resolvable:$true] %s15_s10 }
   0x4   :  { %p260_p1 = scmp.lt.u32.totalorder %s256_s13, %s385_s0 }
   0x6   :  { %p262_p2 = pnand %p260_p1, %p257_p0 }
   0x8   :  { %265 = shalt.err (!%p262_p2)
}
   0x9   :  { %s266_s18 = scalar_lea.vmem %s16_s10, 1536  ;;  %p271_p4 = scmp.lt.s32.totalorder %s16_s10, %s16_s10 }
   0xa   :  { %p267_p3 = scmp.ne.s32.totalorder %s16_s10, %s266_s18  ;;  %p272_p5 = scmp.lt.s32.totalorder %s266_s18, %s266_s18 }
   0xc   :  { %p273_p6 = por %p272_p5, %p271_p4 }
   0xe   :  { %p274_p7 = pnand %p273_p6, %p267_p3 }
  0x10   :  { %277 = shalt.err (!%p274_p7)
}
  0x11   :  { %s329_s19 = smov 256   ;;  %s330_s20 = smov 16  }
  0x12   :  { %21 = dma.hbm_to_vmem [thread:$0]  %s385_s0, 1536, %s16_s10, [#allocation3], %s329_s19, %s329_s19, %s330_s20  }
  0x13   :  { %s331_s23 = smov [#allocation5]   ;;  %s278_s27 = scalar_lea.hbm %s386_s1, 64 }
  0x14   :  { %s28_s24 = sshll.u32 %s331_s23, 4  ;;  %p279_p8 = scmp.ne.s32.totalorder %s386_s1, %s278_s27  ;;  %s29_s24 = int_to_ptr.vmem [resolvable:$true] %s28_s24 }
  0x15   :  { %p282_p9 = scmp.lt.u32.totalorder %s278_s27, %s386_s1 }
  0x17   :  { %p284_p10 = pnand %p282_p9, %p279_p8 }
  0x19   :  { %287 = shalt.err (!%p284_p10)
}
  0x1a   :  { %s288_s4 = scalar_lea.vmem %s29_s24, 64  ;;  %p293_p12 = scmp.lt.s32.totalorder %s29_s24, %s29_s24 }
  0x1b   :  { %p289_p11 = scmp.ne.s32.totalorder %s29_s24, %s288_s4  ;;  %p294_p13 = scmp.lt.s32.totalorder %s288_s4, %s288_s4 }
  0x1d   :  { %p295_p0 = por %p294_p13, %p293_p12 }
  0x1f   :  { %p296_p1 = pnand %p295_p0, %p289_p11 }
  0x21   :  { %299 = shalt.err (!%p296_p1)
}
  0x22   :  { %31 = dma.hbm_to_vmem [thread:$0]  %s386_s1, 64, %s29_s24, [#allocation6]  }
  0x23   :  { %322 = dma.done.wait [#allocation3], 1536  }
  0x24   :  { %323 = vsyncadd [#allocation3], 4294965760 }
  0x25   :  { %324 = dma.done.wait [#allocation6], 64  }
  0x26   :  { %325 = vsyncadd [#allocation6], 4294967232  ;;  %v332_v0 = vmov 0   ;;  %v238_v1 = vld [vmem:[#allocation2 + $0x4] ss:$16 sps:$4 sm:$0xff]   ;;  %vm112_vm0 = vcmask 392192  }
  0x27   :  { %148 = vmatprep.mubr.bf16.mxu0 %v332_v0  ;;  %189 = vmatprep.mubr.bf16.mxu1 %v332_v0  ;;  %v240_v2 = vld [vmem:[#allocation2 + $0xc] ss:$16 sps:$4 sm:$0xff]   ;;  %v242_v3 = vld [vmem:[#allocation2] ss:$16 sps:$4 sm:$0xff]   ;;  %v243_v4 = vld [vmem:[#allocation2 + $0x8] ss:$16 sps:$4 sm:$0xff]  }
  0x28   :  { %116 = vmatprep.subr.bf16.mxu0 %v238_v1  ;;  %157 = vmatprep.subr.bf16.mxu1 %v240_v2  ;;  %v244_v5 = vld [vmem:[#allocation2 + $0x24] ss:$16 sps:$4 sm:$0xff]   ;;  %v246_v6 = vld [vmem:[#allocation2 + $0x2c] ss:$16 sps:$4 sm:$0xff]   ;;  %v248_v7 = vld [vmem:[#allocation2 + $0x20] ss:$16 sps:$4 sm:$0xff]  }
  0x29   :  { %117 = vmatpush1.bf16.msra.mxu0 %v242_v3  ;;  %158 = vmatpush1.bf16.msra.mxu1 %v243_v4  ;;  %v249_v8 = vld [vmem:[#allocation2 + $0x28] ss:$16 sps:$4 sm:$0xff]   ;;  %v250_v9 = vld [vmem:[#allocation2 + $0x44] ss:$16 sps:$4 sm:$0xff]   ;;  %v252_v10 = vld [vmem:[#allocation2 + $0x4c] ss:$16 sps:$4 sm:$0xff]  }
  0x2a   :  { %118 = vmatprep.subr.bf16.mxu0 %v244_v5  ;;  %159 = vmatprep.subr.bf16.mxu1 %v246_v6  ;;  %v254_v11 = vld [vmem:[#allocation2 + $0x40] ss:$16 sps:$4 sm:$0xff]   ;;  %v255_v12 = vld [vmem:[#allocation2 + $0x48] ss:$16 sps:$4 sm:$0xff]   ;;  %s333_s1 = smov [#allocation7]  }
  0x2b   :  { %v39_v13 = vld [vmem:[#allocation5] sm:$0xf]  ;;  %s208_s6 = sshll.u32 %s333_s1, 4  ;;  %s209_s6 = int_to_ptr.vmem [resolvable:$true] %s208_s6 }
  0x2c   :  { %s300_s7 = scalar_lea.vmem %s209_s6, 512  ;;  %p305_p3 = scmp.lt.s32.totalorder %s209_s6, %s209_s6 }
  0x2d   :  { %119 = vmatpush1.bf16.msra.mxu0 %v248_v7  ;;  %160 = vmatpush1.bf16.msra.mxu1 %v249_v8  ;;  %p301_p2 = scmp.ne.s32.totalorder %s209_s6, %s300_s7  ;;  %p306_p4 = scmp.lt.s32.totalorder %s300_s7, %s300_s7 }
  0x2e   :  { %120 = vmatprep.subr.bf16.mxu0 %v250_v9  ;;  %161 = vmatprep.subr.bf16.mxu1 %v252_v10 }
  0x2f   :  { %p307_p5 = por %p306_p4, %p305_p3 }
  0x31   :  { %121 = vmatpush1.bf16.msra.mxu0 %v254_v11  ;;  %162 = vmatpush1.bf16.msra.mxu1 %v255_v12  ;;  %p308_p6 = pnand %p307_p5, %p301_p2 }
  0x34   :  { %230 = vmatmul.mubr.msk.bf16.vlgmr.msra.gmra.mrb[0].mxu0 %vm112_vm0, %v39_v13  ;;  %231 = vmatmul.mubr.msk.bf16.vlgmr.msra.gmra.mrb[0].mxu1 %vm112_vm0, %v39_v13 }
 0x107   :  { %v150_v14 = vpop.f32.mrb[0].mxu0  ;;  %v191_v15 = vpop.f32.mrb[0].mxu1 }
 0x108   :  { %198 = vst [vmem:[#allocation7] sm:$0xff] %v150_v14  ;;  %200 = vst [vmem:[#allocation7 + $0x10] sm:$0xff] %v191_v15  ;;  %v152_v16 = vpop.f32.mrb[1].mxu0  ;;  %v193_v17 = vpop.f32.mrb[1].mxu1 }
 0x109   :  { %199 = vst [vmem:[#allocation7 + $0x8] sm:$0xff] %v152_v16  ;;  %201 = vst [vmem:[#allocation7 + $0x18] sm:$0xff] %v193_v17  ;;  %v154_v18 = vpop.f32.mrb[2].mxu0  ;;  %v195_v19 = vpop.f32.mrb[2].mxu1 }
 0x10a   :  { %v155_v20 = vpop.f32.mrb[3].mxu0  ;;  %v196_v21 = vpop.f32.mrb[3].mxu1 }
 0x10b   :  { %311 = shalt.err (!%p308_p6)
}
 0x10c   :  { %s312_s10 = scalar_lea.hbm %s387_s2, 512 }
 0x10d   :  { %p313_p7 = scmp.ne.s32.totalorder %s387_s2, %s312_s10  ;;  %p316_p8 = scmp.lt.u32.totalorder %s312_s10, %s387_s2 }
 0x10f   :  { %p318_p9 = pnand %p316_p8, %p313_p7 }
 0x111   :  { %321 = shalt.err (!%p318_p9)
}
 0x112   :  { %211 = dma.vmem_to_hbm [thread:$0]  %s209_s6, 512, %s387_s2, [#allocation4]  }
 0x113   :  { %326 = dma.done.wait [#allocation4], 512  }
 0x114   :  { %327 = vsyncadd [#allocation4], 4294966784 }
 0x115   :  { %215 = vsyncpa [#allocation3], 1 }
 0x116   :  { %216 = vsyncpa [#allocation6], 1 }
 0x117   :  { %217 = vsyncpa [#allocation4], 1 }

</bundles_post_ra>
